<compile_context>
chip_gen: v6e
topology: v6e:2x2x1
jax: 0.10.0
libtpu: 0.0.40
codegen_flags: <defaults>
</compile_context>

<pallas_src>
import numpy as np
import jax
import jax.numpy as jnp
from jax.experimental import pallas as pl
from jax.experimental.pallas import tpu as pltpu


def _modular_kernel(x_ref, noise_ref, mask_ref, o_ref):
    # x_ref / o_ref: (TB, 3072) lane-dense tile; noise_ref / mask_ref: (1, 3072).
    x = x_ref[...]
    noise = noise_ref[...]   # (1, 3072) broadcasts over the TB sublane rows
    mask = mask_ref[...]

    data1 = x * 255.0
    x0 = jnp.trunc(data1)
    x1 = data1 - x0                        # fractional part, in [0, 1)
    x2 = x0 + noise                        # x0 in [0,255], noise in [0,255] => x2 < 512
    # x2 % 256 via a single conditional subtract (valid while noise < 256).
    x0_1 = jnp.where(x2 >= 256.0, x2 - 256.0, x2)
    # (x1 + x0_1) >= 0, so only the upper clamp is needed.
    enc = jnp.minimum((x1 + x0_1) * (1.0 / 255.0), 1.0)
    # enc*mask + x*(1-mask) == x + mask*(enc - x)
    o_ref[...] = x + mask * (enc - x)


def _pick_batch_tile(B, max_tb=512):
    """Largest batch tile: full B if small, else a multiple-of-8 divisor <= max_tb."""
    if B <= max_tb:
        return B                        # block == full array dim: always legal
    for tb in (512, 256, 128, 64, 32, 16, 8):
        if B % tb == 0:
            return tb
    return 8                            # ragged tail handled by Pallas block masking


def modular_forward(x_nchw, random_noise, mask):
    """x_nchw: (B, 3, 32, 32) float32; random_noise/mask: (3, 32, 32) float32."""
    B, C, H, W = x_nchw.shape
    CHW = C * H * W                     # 3072 = 24 * 128 -> lane-dense last axis

    x2d = x_nchw.reshape(B, CHW)
    noise2d = random_noise.reshape(1, CHW)
    mask2d = mask.reshape(1, CHW)

    TB = _pick_batch_tile(B)
    grid = (pl.cdiv(B, TB),)

    out = pl.pallas_call(
        _modular_kernel,
        out_shape=jax.ShapeDtypeStruct((B, CHW), x_nchw.dtype),
        grid_spec=pltpu.PrefetchScalarGridSpec(
            num_scalar_prefetch=0,
            grid=grid,
            in_specs=[
                pl.BlockSpec((TB, CHW), lambda t: (t, 0)),
                pl.BlockSpec((1, CHW), lambda t: (0, 0)),   # noise: VMEM-resident
                pl.BlockSpec((1, CHW), lambda t: (0, 0)),   # mask:  VMEM-resident
            ],
            out_specs=pl.BlockSpec((TB, CHW), lambda t: (t, 0)),
        ),
        compiler_params=pltpu.CompilerParams(
            dimension_semantics=("parallel",),
        ),
    )(x2d, noise2d, mask2d)

    return out.reshape(B, C, H, W)


def make_params(seed=0, b=128, mask_p=0.5):
    """Deterministic re-creation of Modular.__init__ parameters (shapes [3,32,32])."""
    np.random.seed(seed)
    size = (3, 32, 32)
    if b == 0:
        random_noise = np.zeros(size, dtype=np.float32)
    else:
        random_noise = np.random.randint(
            low=67, high=b, size=size, dtype=np.uint8
        ).astype(np.float32)
    # The in-kernel conditional-subtract mod assumes noise < 256 (true for uint8 noise).
    assert random_noise.max() < 256.0
    mask = np.random.choice([0, 1], size=size, p=[1 - mask_p, mask_p]).astype(np.float32)
    return jnp.asarray(random_noise), jnp.asarray(mask)


def _reference(x, noise, mask):
    data1 = x * 255.0
    x0 = jnp.trunc(data1)
    x1 = data1 - x0
    x2 = x0 + noise[None]
    x0_1 = jnp.mod(x2, 256.0)
    return jnp.clip((x1 + x0_1) / 255.0, 0.0, 1.0) * mask[None] + x * (1.0 - mask[None])


if __name__ == "__main__":
    key = jax.random.PRNGKey(0)
    B = 2
    x = jax.random.uniform(key, (B, 3, 32, 32), dtype=jnp.float32)  # images in [0, 1]

    random_noise, mask = make_params(seed=0, b=128, mask_p=0.5)

    out = modular_forward(x, random_noise, mask)
    out = jax.block_until_ready(out)

    ref = _reference(x, random_noise, mask)
    assert out.shape == x.shape and out.dtype == x.dtype
    assert jnp.allclose(out, ref, atol=1e-5), "mismatch vs reference"

    print("KERNEL_OK")
</pallas_src>

<mosaic_0001>
module attributes {stable_mosaic.version = 11 : i64} {
  func.func @_modular_kernel(%arg0: i32, %arg1: memref<2x3072xf32, #tpu.memory_space<vmem>>, %arg2: memref<1x3072xf32, #tpu.memory_space<vmem>>, %arg3: memref<1x3072xf32, #tpu.memory_space<vmem>>, %arg4: memref<2x3072xf32, #tpu.memory_space<vmem>>) attributes {dimension_semantics = [#tpu.dimension_semantics<parallel>], iteration_bounds = array<i64: 1>, scalar_prefetch = 0 : i64, scratch_operands = 0 : i64, tpu.core_type = #tpu.core_type<tc>, window_params = [{transform_indices = @transform_0, window_bounds = array<i64: 2, 3072>}, {pipeline_mode = #tpu.pipeline_mode<synchronous>, transform_indices = @transform_1, window_bounds = array<i64: 1, 3072>}, {pipeline_mode = #tpu.pipeline_mode<synchronous>, transform_indices = @transform_2, window_bounds = array<i64: 1, 3072>}, {transform_indices = @transform_3, window_bounds = array<i64: 2, 3072>}]} {
    %c0 = arith.constant 0 : index
    %c0_0 = arith.constant 0 : index
    %0 = vector.load %arg1[%c0, %c0_0] : memref<2x3072xf32, #tpu.memory_space<vmem>>, vector<2x3072xf32>
    %c0_1 = arith.constant 0 : index
    %c0_2 = arith.constant 0 : index
    %1 = vector.load %arg2[%c0_1, %c0_2] : memref<1x3072xf32, #tpu.memory_space<vmem>>, vector<1x3072xf32>
    %c0_3 = arith.constant 0 : index
    %c0_4 = arith.constant 0 : index
    %2 = vector.load %arg3[%c0_3, %c0_4] : memref<1x3072xf32, #tpu.memory_space<vmem>>, vector<1x3072xf32>
    %cst = arith.constant 2.550000e+02 : f32
    %3 = vector.broadcast %cst : f32 to vector<2x3072xf32>
    %4 = arith.mulf %0, %3 : vector<2x3072xf32>
    %cst_5 = arith.constant 0.000000e+00 : f32
    %5 = vector.broadcast %cst_5 : f32 to vector<2x3072xf32>
    %6 = arith.cmpf olt, %4, %5 : vector<2x3072xf32>
    %7 = math.ceil %4 : vector<2x3072xf32>
    %8 = math.floor %4 : vector<2x3072xf32>
    %9 = arith.select %6, %7, %8 : vector<2x3072xi1>, vector<2x3072xf32>
    %10 = arith.subf %4, %9 : vector<2x3072xf32>
    %11 = vector.broadcast %1 : vector<1x3072xf32> to vector<2x3072xf32>
    %12 = arith.addf %9, %11 : vector<2x3072xf32>
    %cst_6 = arith.constant 2.560000e+02 : f32
    %13 = vector.broadcast %cst_6 : f32 to vector<2x3072xf32>
    %14 = arith.cmpf oge, %12, %13 : vector<2x3072xf32>
    %cst_7 = arith.constant 2.560000e+02 : f32
    %15 = vector.broadcast %cst_7 : f32 to vector<2x3072xf32>
    %16 = arith.subf %12, %15 : vector<2x3072xf32>
    %17 = arith.select %14, %16, %12 : vector<2x3072xi1>, vector<2x3072xf32>
    %18 = arith.addf %10, %17 : vector<2x3072xf32>
    %cst_8 = arith.constant 0.00392156886 : f32
    %19 = vector.broadcast %cst_8 : f32 to vector<2x3072xf32>
    %20 = arith.mulf %18, %19 : vector<2x3072xf32>
    %cst_9 = arith.constant 1.000000e+00 : f32
    %21 = vector.broadcast %cst_9 : f32 to vector<2x3072xf32>
    %22 = arith.minimumf %20, %21 : vector<2x3072xf32>
    %23 = arith.subf %22, %0 : vector<2x3072xf32>
    %24 = vector.broadcast %2 : vector<1x3072xf32> to vector<2x3072xf32>
    %25 = arith.mulf %24, %23 : vector<2x3072xf32>
    %26 = arith.addf %0, %25 : vector<2x3072xf32>
    %c0_10 = arith.constant 0 : index
    %c0_11 = arith.constant 0 : index
    %27 = vector.load %arg4[%c0_10, %c0_11] : memref<2x3072xf32, #tpu.memory_space<vmem>>, vector<2x3072xf32>
    tpu.vector_store %arg4[%c0_10, %c0_11], %26 {strides = array<i32>} : memref<2x3072xf32, #tpu.memory_space<vmem>>, vector<2x3072xf32>,
    return
  }
  func.func @transform_0(%arg0: i32) -> (i32, i32) {
    %c0_i32 = arith.constant 0 : i32
    %c0_i32_0 = arith.constant 0 : i32
    return %arg0, %c0_i32 : i32, i32
  }
  func.func @transform_1(%arg0: i32) -> (i32, i32) {
    %c0_i32 = arith.constant 0 : i32
    %c0_i32_0 = arith.constant 0 : i32
    %c0_i32_1 = arith.constant 0 : i32
    return %c0_i32, %c0_i32_0 : i32, i32
  }
  func.func @transform_2(%arg0: i32) -> (i32, i32) {
    %c0_i32 = arith.constant 0 : i32
    %c0_i32_0 = arith.constant 0 : i32
    %c0_i32_1 = arith.constant 0 : i32
    return %c0_i32, %c0_i32_0 : i32, i32
  }
  func.func @transform_3(%arg0: i32) -> (i32, i32) {
    %c0_i32 = arith.constant 0 : i32
    %c0_i32_0 = arith.constant 0 : i32
    return %arg0, %c0_i32 : i32, i32
  }
}

</mosaic_0001>

<bundles_post_ra>
// kernel: tpu_custom_call.1
= control target key start
LH: loop header
LB: loop body
LE: loop exit
PB: predicated region body
PF: predicated region fallthrough
CT: control target
= control target key end

     0   :  { %8 = vsyncpa [#allocation3], 0  ;;  %s1145_s0 = inlined_call_operand.hbm [shape: f32[2,3072], index: 0, kind: input, shape index: {}]   ;;  %s1146_s1 = inlined_call_operand.hbm [shape: f32[1,3072], index: 1, kind: input, shape index: {}]   ;;  %s1147_s2 = inlined_call_operand.hbm [shape: f32[1,3072], index: 2, kind: input, shape index: {}]   ;;  %s1148_s3 = inlined_call_operand.hbm [shape: f32[2,3072], index: 3, kind: output, shape index: {}]  }
   0x1   :  { %9 = vsyncpa [#allocation6], 0 }
   0x2   :  { %10 = vsyncpa [#allocation4], 0  ;;  %s889_s12 = smov [#allocation5]   ;;  %s890_s14 = smov [#allocation2]  }
   0x3   :  { %s27_s13 = sshll.u32 %s889_s12, 4  ;;  %s17_s15 = sshll.u32 %s890_s14, 4  ;;  %s28_s13 = int_to_ptr.vmem [resolvable:$true] %s27_s13  ;;  %s18_s15 = int_to_ptr.vmem [resolvable:$true] %s17_s15 }
   0x4   :  { %s811_s16 = scalar_lea.vmem %s28_s13, 384  ;;  %p816_p1 = scmp.lt.s32.totalorder %s28_s13, %s28_s13 }
   0x5   :  { %p812_p0 = scmp.ne.s32.totalorder %s28_s13, %s811_s16  ;;  %p817_p2 = scmp.lt.s32.totalorder %s811_s16, %s811_s16 }
   0x7   :  { %p818_p3 = por %p817_p2, %p816_p1 }
   0x9   :  { %p819_p4 = pnand %p818_p3, %p812_p0 }
   0xb   :  { %822 = shalt.err (!%p819_p4)
}
   0xc   :  { %30 = dma.hbm_to_vmem [thread:$0]  %s1146_s1, 384, %s28_s13, [#allocation6]  }
   0xd   :  { %s831_s19 = scalar_lea.vmem %s18_s15, 768  ;;  %p836_p6 = scmp.lt.s32.totalorder %s18_s15, %s18_s15 }
   0xe   :  { %p832_p5 = scmp.ne.s32.totalorder %s18_s15, %s831_s19  ;;  %p837_p7 = scmp.lt.s32.totalorder %s831_s19, %s831_s19 }
  0x10   :  { %p838_p8 = por %p837_p7, %p836_p6 }
  0x12   :  { %p839_p9 = pnand %p838_p8, %p832_p5 }
  0x14   :  { %842 = shalt.err (!%p839_p9)
}
  0x15   :  { %20 = dma.hbm_to_vmem [thread:$0]  %s1145_s0, 768, %s18_s15, [#allocation3]  }
  0x16   :  { %s891_s22 = smov [#allocation7]  }
  0x17   :  { %s37_s23 = sshll.u32 %s891_s22, 4  ;;  %s38_s23 = int_to_ptr.vmem [resolvable:$true] %s37_s23 }
  0x18   :  { %s851_s24 = scalar_lea.vmem %s38_s23, 384  ;;  %p856_p11 = scmp.lt.s32.totalorder %s38_s23, %s38_s23 }
  0x19   :  { %p852_p10 = scmp.ne.s32.totalorder %s38_s23, %s851_s24  ;;  %p857_p12 = scmp.lt.s32.totalorder %s851_s24, %s851_s24 }
  0x1b   :  { %p858_p13 = por %p857_p12, %p856_p11 }
  0x1d   :  { %p859_p0 = pnand %p858_p13, %p852_p10 }
  0x1f   :  { %862 = shalt.err (!%p859_p0)
}
  0x20   :  { %40 = dma.hbm_to_vmem [thread:$0]  %s1147_s2, 384, %s38_s23, [#allocation6]  }
  0x21   :  { %883 = dma.done.wait [#allocation3], 768  }
  0x22   :  { %884 = vsyncadd [#allocation3], 4294966528 }
  0x23   :  { %885 = dma.done.wait [#allocation6], 768  }
  0x24   :  { %886 = vsyncadd [#allocation6], 4294966528  ;;  %v101_v0 = vlaneseq  ;;  %v892_v1 = vmov 1983009808   ;;  %v931_v9 = vld [vmem:[#allocation2] sm:$0xff]  ;;  %v56_v10 = vld [vmem:[#allocation5] sm:$0xff] }
  0x25   :  { %v200_v2 = vunpack.c.l.s4 %v892_v1  ;;  %v62_v15 = vmul.f32 255.0, %v931_v9  ;;  %v945_v19 = vld [vmem:[#allocation2 + $0x8] sm:$0xff]  ;;  %v962_v35 = vld [vmem:[#allocation2 + $0x10] sm:$0xff]  ;;  %v57_v40 = vld [vmem:[#allocation5 + $0x8] sm:$0xff]  ;;  %s893_s0 = smov [#allocation8]  }
  0x26   :  { %v102_v3 = vshrl.u32 %v101_v0, 7  ;;  %v950_v22 = vld [vmem:[#allocation7] sm:$0xff]  ;;  %v953_v27 = vmul.f32 255.0, %v945_v19  ;;  %v976_v47 = vmul.f32 255.0, %v962_v35  ;;  %v988_v62 = vld [vmem:[#allocation2 + $0x18] sm:$0xff]  ;;  %s782_s2 = sshll.u32 %s893_s0, 4  ;;  %s783_s2 = int_to_ptr.vmem [resolvable:$true] %s782_s2 }
  0x27   :  { %v201_v4 = vunpack.c.0.s8 %v200_v2  ;;  %vm68_vm0 = vcmp.lt.f32.partialorder %v62_v15, 0.0  ;;  %v74_v23 = vceil.f32 %v62_v15  ;;  %v80_v24 = vfloor.f32 %v62_v15  ;;  %s863_s26 = scalar_lea.vmem %s783_s2, 768  ;;  %p868_p2 = scmp.lt.s32.totalorder %s783_s2, %s783_s2 }
  0x28   :  { %v923_v5 = vsub.s32 0, %v102_v3  ;;  %v925_v6 = vsub.s32 1, %v102_v3  ;;  %v927_v7 = vsub.s32 2, %v102_v3  ;;  %v929_v8 = vsub.s32 3, %v102_v3  ;;  %p864_p1 = scmp.ne.s32.totalorder %s783_s2, %s863_s26  ;;  %p869_p3 = scmp.lt.s32.totalorder %s863_s26, %s863_s26 }
  0x29   :  { %v933_v11 = vsub.s32 %v201_v4, %v102_v3  ;;  %v935_v12 = vsub.s32 4, %v102_v3  ;;  %v937_v13 = vsub.s32 5, %v102_v3  ;;  %v939_v14 = vsub.s32 6, %v102_v3 }
  0x2a   :  { %v104_v16 = vrot.slane %v56_v10, %v923_v5  ;;  %v108_v17 = vrot.slane %v56_v10, %v925_v6  ;;  %v112_v18 = vrot.slane %v56_v10, %v927_v7  ;;  %v116_v20 = vrot.slane %v56_v10, %v929_v8  ;;  %p870_p4 = por %p869_p3, %p868_p2 }
  0x2b   :  { %v948_v21 = vsub.s32 7, %v102_v3  ;;  %v120_v28 = vrot.slane %v56_v10, %v935_v12  ;;  %v124_v30 = vrot.slane %v56_v10, %v937_v13  ;;  %v128_v31 = vrot.slane %v56_v10, %v939_v14 }
  0x2c   :  { %v197_v25 = vcombine.low %v104_v16, %v108_v17  ;;  %v198_v26 = vcombine.low %v112_v18, %v116_v20  ;;  %v86_v32 = vsel %vm68_vm0, %v74_v23, %v80_v24  ;;  %v359_v34 = vrot.slane %v950_v22, %v923_v5  ;;  %p871_p5 = pnand %p870_p4, %p864_p1 }
  0x2d   :  { %v75_v36 = vceil.f32 %v953_v27  ;;  %v81_v37 = vfloor.f32 %v953_v27  ;;  %v132_v38 = vrot.slane %v56_v10, %v948_v21  ;;  %v214_v39 = vcombine.low %v120_v28, %v124_v30 }
  0x2e   :  { %v205_v29 = vrot.slane %v197_v25, %v933_v11  ;;  %v212_v33 = vrot.slane %v198_v26, %v933_v11  ;;  %v363_v42 = vrot.slane %v950_v22, %v925_v6  ;;  %v367_v43 = vrot.slane %v950_v22, %v927_v7 }
  0x2f   :  { %vm69_vm1 = vcmp.lt.f32.partialorder %v953_v27, 0.0  ;;  %v371_v44 = vrot.slane %v950_v22, %v929_v8  ;;  %v215_v45 = vcombine.low %v128_v31, %v132_v38  ;;  %v222_v46 = vrot.slane %v214_v39, %v933_v11 }
  0x30   :  { %v213_v41 = vcombine.low %v205_v29, %v212_v33  ;;  %v92_v48 = vsub.f32 %v62_v15, %v86_v32  ;;  %v136_v50 = vrot.slane %v57_v40, %v923_v5  ;;  %v140_v51 = vrot.slane %v57_v40, %v925_v6  ;;  %v995_v15 = vld [vmem:[#allocation7 + $0x8] sm:$0xff] }
  0x31   :  { %v87_v52 = vsel %vm69_vm1, %v75_v36, %v81_v37  ;;  %v229_v53 = vrot.slane %v215_v45, %v933_v11  ;;  %v76_v54 = vceil.f32 %v976_v47  ;;  %v82_v55 = vfloor.f32 %v976_v47 }
  0x32   :  { %v305_v49 = vadd.f32 %v213_v41, %v86_v32  ;;  %v144_v57 = vrot.slane %v57_v40, %v927_v7  ;;  %v148_v58 = vrot.slane %v57_v40, %v929_v8  ;;  %v375_v60 = vrot.slane %v950_v22, %v935_v12 }
  0x33   :  { %v230_v59 = vcombine.low %v222_v46, %v229_v53  ;;  %vm70_vm3 = vcmp.lt.f32.partialorder %v976_v47, 0.0  ;;  %v231_v61 = vcombine.low %v136_v50, %v140_v51  ;;  %v379_v0 = vrot.slane %v950_v22, %v937_v13 }
  0x34   :  { %vm311_vm2 = vcmp.ge.f32.partialorder %v305_v49, 256.0  ;;  %v792_v56 = vadd.f32 -256.0, %v305_v49  ;;  %v383_v1 = vrot.slane %v950_v22, %v939_v14  ;;  %v232_v2 = vcombine.low %v144_v57, %v148_v58 }
  0x35   :  { %v93_v4 = vsub.f32 %v953_v27, %v87_v52  ;;  %v306_v10 = vadd.f32 %v230_v59, %v87_v52  ;;  %v239_v16 = vrot.slane %v231_v61, %v933_v11  ;;  %v88_v17 = vsel %vm70_vm3, %v76_v54, %v82_v55 }
  0x36   :  { %v323_v63 = vsel %vm311_vm2, %v792_v56, %v305_v49  ;;  %v246_v18 = vrot.slane %v232_v2, %v933_v11  ;;  %v1000_v20 = vmul.f32 255.0, %v988_v62  ;;  %v152_v23 = vrot.slane %v57_v40, %v935_v12 }
  0x37   :  { %v329_v3 = vadd.f32 %v323_v63, %v92_v48  ;;  %vm312_vm4 = vcmp.ge.f32.partialorder %v306_v10, 256.0  ;;  %v793_v25 = vadd.f32 -256.0, %v306_v10  ;;  %v156_v26 = vrot.slane %v57_v40, %v937_v13 }
  0x38   :  { %v387_v27 = vrot.slane %v950_v22, %v948_v21  ;;  %v247_v28 = vcombine.low %v239_v16, %v246_v18  ;;  %v391_v29 = vrot.slane %v995_v15, %v923_v5  ;;  %v77_v30 = vceil.f32 %v1000_v20 }
  0x39   :  { %v335_v24 = vmul.f32 0.003921569, %v329_v3  ;;  %v324_v32 = vsel %vm312_vm4, %v793_v25, %v306_v10  ;;  %v160_v33 = vrot.slane %v57_v40, %v939_v14  ;;  %v164_v36 = vrot.slane %v57_v40, %v948_v21 }
  0x3a   :  { %v330_v37 = vadd.f32 %v324_v32, %v93_v4  ;;  %v307_v38 = vadd.f32 %v247_v28, %v88_v17  ;;  %v83_v39 = vfloor.f32 %v1000_v20  ;;  %v248_v41 = vcombine.low %v152_v23, %v156_v26 }
  0x3b   :  { %v341_v31 = vmin.f32 %v335_v24, 1.0  ;;  %v94_v46 = vsub.f32 %v976_v47, %v88_v17  ;;  %vm71_vm5 = vcmp.lt.f32.partialorder %v1000_v20, 0.0  ;;  %v249_v48 = vcombine.low %v160_v33, %v164_v36 }
  0x3c   :  { %v336_v49 = vmul.f32 0.003921569, %v330_v37  ;;  %vm313_vm6 = vcmp.ge.f32.partialorder %v307_v38, 256.0  ;;  %v794_v50 = vadd.f32 -256.0, %v307_v38  ;;  %v256_v51 = vrot.slane %v248_v41, %v933_v11 }
  0x3d   :  { %v347_v45 = vsub.f32 %v341_v31, %v931_v9  ;;  %v395_v53 = vrot.slane %v995_v15, %v925_v6  ;;  %v263_v54 = vrot.slane %v249_v48, %v933_v11  ;;  %v399_v47 = vrot.slane %v995_v15, %v927_v7  ;;  %v1044_v31 = vld [vmem:[#allocation2 + $0x20] sm:$0xff] }
  0x3e   :  { %v342_v55 = vmin.f32 %v336_v49, 1.0  ;;  %v325_v56 = vsel %vm313_vm6, %v794_v50, %v307_v38  ;;  %v89_v57 = vsel %vm71_vm5, %v77_v30, %v83_v39  ;;  %v403_v3 = vrot.slane %v995_v15, %v929_v8  ;;  %v1052_v39 = vld [vmem:[#allocation5 + $0x10] sm:$0xff] }
  0x3f   :  { %v482_v52 = vcombine.high %v347_v45, %v347_v45  ;;  %v489_v40 = vrot.slane %v347_v45, %v933_v11  ;;  %v331_v63 = vadd.f32 %v325_v56, %v94_v46  ;;  %v95_v4 = vsub.f32 %v1000_v20, %v89_v57 }
  0x40   :  { %v348_v2 = vsub.f32 %v342_v55, %v945_v19  ;;  %v264_v10 = vcombine.low %v256_v51, %v263_v54  ;;  %v407_v26 = vrot.slane %v995_v15, %v935_v12 }
  0x41   :  { %v496_v58 = vrot.slane %v482_v52, %v933_v11  ;;  %v497_v59 = vcombine.high %v489_v40, %v489_v40  ;;  %v608_v61 = vmul.f32 %v489_v40, %v359_v34  ;;  %v337_v23 = vmul.f32 0.003921569, %v331_v63 }
  0x42   :  { %v499_v34 = vcombine.high %v348_v2, %v348_v2  ;;  %v506_v24 = vrot.slane %v348_v2, %v933_v11  ;;  %v308_v25 = vadd.f32 %v264_v10, %v89_v57 }
  0x43   :  { %v498_v16 = vcombine.high %v496_v58, %v496_v58  ;;  %v609_v17 = vmul.f32 %v497_v59, %v363_v42  ;;  %v610_v18 = vmul.f32 %v496_v58, %v367_v43  ;;  %v343_v30 = vmin.f32 %v337_v23, 1.0 }
  0x44   :  { %v411_v42 = vrot.slane %v995_v15, %v937_v13  ;;  %v513_v43 = vrot.slane %v499_v34, %v933_v11  ;;  %v514_v32 = vcombine.high %v506_v24, %v506_v24  ;;  %v612_v33 = vmul.f32 %v506_v24, %v375_v60 }
  0x45   :  { %v611_v20 = vmul.f32 %v498_v16, %v371_v44  ;;  %v656_v28 = vcombine.low %v608_v61, %v609_v17  ;;  %vm314_vm7 = vcmp.ge.f32.partialorder %v308_v25, 256.0  ;;  %v349_v44 = vsub.f32 %v343_v30, %v962_v35 }
  0x46   :  { %v795_v38 = vadd.f32 -256.0, %v308_v25  ;;  %v515_v41 = vcombine.high %v513_v43, %v513_v43  ;;  %v613_v45 = vmul.f32 %v514_v32, %v379_v0  ;;  %v614_v46 = vmul.f32 %v513_v43, %v383_v1 }
  0x47   :  { %v657_v36 = vcombine.low %v610_v18, %v611_v20  ;;  %v664_v37 = vrot.slane %v656_v28, %v933_v11  ;;  %v1061_v60 = vmul.f32 255.0, %v1044_v31  ;;  %v516_v49 = vcombine.high %v349_v44, %v349_v44 }
  0x48   :  { %v523_v50 = vrot.slane %v349_v44, %v933_v11  ;;  %v326_v51 = vsel %vm314_vm7, %v795_v38, %v308_v25  ;;  %v615_v52 = vmul.f32 %v515_v41, %v387_v27  ;;  %v673_v40 = vcombine.low %v612_v33, %v613_v45 }
  0x49   :  { %v671_v48 = vrot.slane %v657_v36, %v933_v11  ;;  %v332_v54 = vadd.f32 %v326_v51, %v95_v4  ;;  %v168_v0 = vrot.slane %v1052_v39, %v923_v5  ;;  %v530_v1 = vrot.slane %v516_v49, %v933_v11 }
  0x4a   :  { %v531_v56 = vcombine.high %v523_v50, %v523_v50  ;;  %v616_v57 = vmul.f32 %v523_v50, %v391_v29  ;;  %v674_v58 = vcombine.low %v614_v46, %v615_v52  ;;  %v681_v59 = vrot.slane %v673_v40, %v933_v11 }
  0x4b   :  { %v672_v55 = vcombine.low %v664_v37, %v671_v48  ;;  %v338_v61 = vmul.f32 0.003921569, %v332_v54  ;;  %v78_v22 = vceil.f32 %v1061_v60  ;;  %v532_v63 = vcombine.high %v530_v1, %v530_v1 }
  0x4c   :  { %v617_v2 = vmul.f32 %v531_v56, %v395_v53  ;;  %v618_v4 = vmul.f32 %v530_v1, %v399_v47  ;;  %v688_v10 = vrot.slane %v674_v58, %v933_v11  ;;  %v172_v17 = vrot.slane %v1052_v39, %v925_v6 }
  0x4d   :  { %v764_v27 = vadd.f32 %v672_v55, %v931_v9  ;;  %v344_v16 = vmin.f32 %v338_v61, 1.0  ;;  %v176_v29 = vrot.slane %v1052_v39, %v927_v7  ;;  %v619_v18 = vmul.f32 %v532_v63, %v403_v3  ;;  %v1090_v3 = vld [vmem:[#allocation2 + $0x28] sm:$0xff] }
  0x4e   :  { %v690_v23 = vcombine.low %v616_v57, %v617_v2  ;;  %v84_v34 = vfloor.f32 %v1061_v60  ;;  %v180_v9 = vrot.slane %v1052_v39, %v929_v8  ;;  %v689_v24 = vcombine.low %v681_v59, %v688_v10 }
  0x4f   :  { %770 = vst [vmem:[#allocation8] sm:$0xff] %v764_v27  ;;  %v350_v53 = vsub.f32 %v344_v16, %v988_v62  ;;  %vm72_vm8 = vcmp.lt.f32.partialorder %v1061_v60, 0.0  ;;  %v265_v47 = vcombine.low %v168_v0, %v172_v17  ;;  %v691_v25 = vcombine.low %v618_v4, %v619_v18 }
  0x50   :  { %v698_v20 = vrot.slane %v690_v23, %v933_v11  ;;  %v415_v28 = vrot.slane %v995_v15, %v939_v14  ;;  %v266_v30 = vcombine.low %v176_v29, %v180_v9  ;;  %v765_v43 = vadd.f32 %v689_v24, %v945_v19  ;;  %v61_v23 = vld [vmem:[#allocation7 + $0x10] sm:$0xff] }
  0x51   :  { %v533_v32 = vcombine.high %v350_v53, %v350_v53  ;;  %v540_v33 = vrot.slane %v350_v53, %v933_v11  ;;  %v273_v36 = vrot.slane %v265_v47, %v933_v11  ;;  %v705_v37 = vrot.slane %v691_v25, %v933_v11 }
  0x52   :  { %v419_v44 = vrot.slane %v995_v15, %v948_v21  ;;  %v90_v38 = vsel %vm72_vm8, %v78_v22, %v84_v34  ;;  %v280_v41 = vrot.slane %v266_v30, %v933_v11  ;;  %771 = vst [vmem:[#allocation8 + $0x8] sm:$0xff] %v765_v43  ;;  %v67_v48 = vmul.f32 255.0, %v1090_v3 }
  0x53   :  { %v547_v45 = vrot.slane %v533_v32, %v933_v11  ;;  %v548_v46 = vcombine.high %v540_v33, %v540_v33  ;;  %v620_v19 = vmul.f32 %v540_v33, %v407_v26  ;;  %v706_v49 = vcombine.low %v698_v20, %v705_v37 }
  0x54   :  { %v281_v50 = vcombine.low %v273_v36, %v280_v41  ;;  %v184_v51 = vrot.slane %v1052_v39, %v935_v12  ;;  %v96_v0 = vsub.f32 %v1061_v60, %v90_v38  ;;  %v188_v26 = vrot.slane %v1052_v39, %v937_v13 }
  0x55   :  { %v549_v52 = vcombine.high %v547_v45, %v547_v45  ;;  %v621_v40 = vmul.f32 %v548_v46, %v411_v42  ;;  %v622_v54 = vmul.f32 %v547_v45, %v415_v28  ;;  %v766_v55 = vadd.f32 %v706_v49, %v962_v35 }
  0x56   :  { %v309_v1 = vadd.f32 %v281_v50, %v90_v38  ;;  %v192_v56 = vrot.slane %v1052_v39, %v939_v14  ;;  %v79_v59 = vceil.f32 %v67_v48  ;;  %v196_v61 = vrot.slane %v1052_v39, %v948_v21 }
  0x57   :  { %v623_v57 = vmul.f32 %v549_v52, %v419_v44  ;;  %v707_v58 = vcombine.low %v620_v19, %v621_v40  ;;  %772 = vst [vmem:[#allocation8 + $0x10] sm:$0xff] %v766_v55  ;;  %v85_v42 = vfloor.f32 %v67_v48  ;;  %v282_v60 = vcombine.low %v184_v51, %v188_v26 }
  0x58   :  { %vm315_vm9 = vcmp.ge.f32.partialorder %v309_v1, 256.0  ;;  %v796_v15 = vadd.f32 -256.0, %v309_v1  ;;  %vm73_vm10 = vcmp.lt.f32.partialorder %v67_v48, 0.0  ;;  %v283_v27 = vcombine.low %v192_v56, %v196_v61 }
  0x59   :  { %v708_v22 = vcombine.low %v622_v54, %v623_v57  ;;  %v715_v35 = vrot.slane %v707_v58, %v933_v11  ;;  %v290_v2 = vrot.slane %v282_v60, %v933_v11  ;;  %v91_v17 = vsel %vm73_vm10, %v79_v59, %v85_v42 }
  0x5a   :  { %v327_v63 = vsel %vm315_vm9, %v796_v15, %v309_v1  ;;  %v297_v16 = vrot.slane %v283_v27, %v933_v11  ;;  %v97_v53 = vsub.f32 %v67_v48, %v91_v17  ;;  %v423_v25 = vrot.slane %v61_v23, %v923_v5 }
  0x5b   :  { %v722_v4 = vrot.slane %v708_v22, %v933_v11  ;;  %v333_v10 = vadd.f32 %v327_v63, %v96_v0  ;;  %v427_v28 = vrot.slane %v61_v23, %v925_v6  ;;  %v431_v30 = vrot.slane %v61_v23, %v927_v7 }
  0x5c   :  { %v298_v18 = vcombine.low %v290_v2, %v297_v16  ;;  %v439_v49 = vrot.slane %v61_v23, %v935_v12  ;;  %v447_v52 = vrot.slane %v61_v23, %v939_v14  ;;  %v451_v55 = vrot.slane %v61_v23, %v948_v21 }
  0x5d   :  { %v723_v39 = vcombine.low %v715_v35, %v722_v4  ;;  %v339_v29 = vmul.f32 0.003921569, %v333_v10 }
  0x5e   :  { %v310_v24 = vadd.f32 %v298_v18, %v91_v17 }
  0x5f   :  { %v767_v34 = vadd.f32 %v723_v39, %v988_v62  ;;  %v345_v9 = vmin.f32 %v339_v29, 1.0  ;;  %v435_v62 = vrot.slane %v61_v23, %v929_v8  ;;  %v443_v8 = vrot.slane %v61_v23, %v937_v13 }
  0x60   :  { %vm316_vm11 = vcmp.ge.f32.partialorder %v310_v24, 256.0  ;;  %v797_v20 = vadd.f32 -256.0, %v310_v24 }
  0x61   :  { %773 = vst [vmem:[#allocation8 + $0x18] sm:$0xff] %v767_v34  ;;  %v351_v47 = vsub.f32 %v345_v9, %v1044_v31 }
  0x62   :  { %v328_v33 = vsel %vm316_vm11, %v797_v20, %v310_v24 }
  0x63   :  { %v550_v43 = vcombine.high %v351_v47, %v351_v47  ;;  %v557_v32 = vrot.slane %v351_v47, %v933_v11  ;;  %v334_v36 = vadd.f32 %v328_v33, %v97_v53 }
  0x65   :  { %v564_v37 = vrot.slane %v550_v43, %v933_v11  ;;  %v565_v44 = vcombine.high %v557_v32, %v557_v32  ;;  %v624_v38 = vmul.f32 %v557_v32, %v423_v25  ;;  %v340_v41 = vmul.f32 0.003921569, %v334_v36 }
  0x67   :  { %v566_v45 = vcombine.high %v564_v37, %v564_v37  ;;  %v625_v5 = vmul.f32 %v565_v44, %v427_v28  ;;  %v626_v46 = vmul.f32 %v564_v37, %v431_v30  ;;  %v346_v19 = vmin.f32 %v340_v41, 1.0 }
  0x69   :  { %v627_v48 = vmul.f32 %v566_v45, %v435_v62  ;;  %v724_v6 = vcombine.low %v624_v38, %v625_v5  ;;  %v352_v7 = vsub.f32 %v346_v19, %v1090_v3 }
  0x6b   :  { %v725_v50 = vcombine.low %v626_v46, %v627_v48  ;;  %v732_v51 = vrot.slane %v724_v6, %v933_v11  ;;  %v567_v40 = vcombine.high %v352_v7, %v352_v7  ;;  %v574_v54 = vrot.slane %v352_v7, %v933_v11 }
  0x6d   :  { %v739_v0 = vrot.slane %v725_v50, %v933_v11  ;;  %v581_v1 = vrot.slane %v567_v40, %v933_v11  ;;  %v582_v26 = vcombine.high %v574_v54, %v574_v54  ;;  %v628_v56 = vmul.f32 %v574_v54, %v439_v49 }
  0x6f   :  { %v740_v57 = vcombine.low %v732_v51, %v739_v0  ;;  %v583_v12 = vcombine.high %v581_v1, %v581_v1  ;;  %v629_v58 = vmul.f32 %v582_v26, %v443_v8  ;;  %v630_v59 = vmul.f32 %v581_v1, %v447_v52 }
  0x71   :  { %v768_v61 = vadd.f32 %v740_v57, %v1044_v31  ;;  %v631_v13 = vmul.f32 %v583_v12, %v451_v55  ;;  %v741_v15 = vcombine.low %v628_v56, %v629_v58 }
  0x73   :  { %774 = vst [vmem:[#allocation8 + $0x20] sm:$0xff] %v768_v61  ;;  %v742_v14 = vcombine.low %v630_v59, %v631_v13  ;;  %v749_v42 = vrot.slane %v741_v15, %v933_v11 }
  0x75   :  { %v756_v60 = vrot.slane %v742_v14, %v933_v11 }
  0x77   :  { %v757_v21 = vcombine.low %v749_v42, %v756_v60 }
  0x79   :  { %v769_v22 = vadd.f32 %v757_v21, %v1090_v3 }
  0x7b   :  { %775 = vst [vmem:[#allocation8 + $0x28] sm:$0xff] %v769_v22 }
  0x7c   :  { %874 = shalt.err (!%p871_p5)
}
  0x7d   :  { %785 = dma.vmem_to_hbm [thread:$0]  %s783_s2, 768, %s1148_s3, [#allocation4]  }
  0x7e   :  { %887 = dma.done.wait [#allocation4], 768  }
  0x7f   :  { %888 = vsyncadd [#allocation4], 4294966528 }
  0x80   :  { %789 = vsyncpa [#allocation3], 1 }
  0x81   :  { %790 = vsyncpa [#allocation6], 1 }
  0x82   :  { %791 = vsyncpa [#allocation4], 1 }

</bundles_post_ra>
